<compile_context>
chip_gen: v5e
topology: v5e:2x2
jax: 0.10.0
libtpu: 0.0.40
codegen_flags: <defaults>
</compile_context>

<pallas_src>
import functools

import jax
import jax.numpy as jnp
from jax import lax
from jax.experimental import pallas as pl
from jax.experimental.pallas import tpu as pltpu

EPS = 1e-5


# ----------------------------------------------------------------------------- kernel ---

def _stage_body(x_ref, scale_ref, shift_ref, w_ref, cbias_ref, out_ref, res_ref):
    """One batch element: out = Conv1d_k3(ReLU(x*scale + shift)) [+ residual].

    x_ref:     (1, lo, Cp) f32 activation block
    scale_ref: (1, Cp) f32   folded-BN scale   (gamma * rsqrt(var+eps))
    shift_ref: (1, Cp) f32   folded-BN shift   (beta - mean*scale)
    w_ref:     (3*Cp, Cp)    stacked conv weights [k=0;k=1;k=2], MXU dtype (bf16 or f32)
    cbias_ref: (1, Cp) f32   conv bias
    res_ref:   (1, lo, Cp) f32 residual (or None)
    out_ref:   (1, lo, Cp) f32
    """
    lo = x_ref.shape[1]
    cp = x_ref.shape[2]

    # Folded BatchNorm (per-channel scale/shift) + ReLU, f32 on the VPU.
    h = jnp.maximum(x_ref[0] * scale_ref[...] + shift_ref[...], 0.0)            # (lo, Cp)

    # Neighbour rows via sublane roll (XLU slot) + boundary mask — no (L,L) matmul.
    row = lax.broadcasted_iota(jnp.int32, (lo, cp), 0)
    prev = jnp.where(row == 0, 0.0, pltpu.roll(h, shift=1, axis=0))             # h[l-1]
    nxt = jnp.where(row == lo - 1, 0.0, pltpu.roll(h, shift=lo - 1, axis=0))    # h[l+1]

    # Fused 3-tap conv: single (lo, 3Cp) @ (3Cp, Cp) MXU matmul, f32 accumulation,
    # conv bias folded into the epilogue.
    taps = jnp.concatenate([prev, h, nxt], axis=1).astype(w_ref.dtype)          # (lo, 3Cp)
    y = jnp.dot(taps, w_ref[...], preferred_element_type=jnp.float32) + cbias_ref[...]

    if res_ref is not None:
        y = y + res_ref[0]
    out_ref[0] = y.astype(out_ref.dtype)


def _make_kernel(add_residual):
    if add_residual:
        def kernel(x_ref, scale_ref, shift_ref, w_ref, cbias_ref, res_ref, out_ref):
            _stage_body(x_ref, scale_ref, shift_ref, w_ref, cbias_ref, out_ref, res_ref)
    else:
        def kernel(x_ref, scale_ref, shift_ref, w_ref, cbias_ref, out_ref):
            _stage_body(x_ref, scale_ref, shift_ref, w_ref, cbias_ref, out_ref, None)
    return kernel


def _bn_relu_conv_stage(x, scale, shift, w_stacked, cbias, residual=None):
    """x: (N, lo, Cp) f32. Returns (N, lo, Cp) f32. Grid over batch, 'parallel'."""
    n, lo, cp = x.shape
    add_res = residual is not None

    tile_spec = pl.BlockSpec((1, lo, cp), lambda b: (b, 0, 0))
    row_spec = pl.BlockSpec((1, cp), lambda b: (0, 0))
    w_spec = pl.BlockSpec((3 * cp, cp), lambda b: (0, 0))

    in_specs = [tile_spec, row_spec, row_spec, w_spec, row_spec]
    args = [x, scale, shift, w_stacked, cbias]
    if add_res:
        in_specs.append(tile_spec)
        args.append(residual)

    # Explicit VMEM budget: double-buffered activation streams + resident params
    # + headroom for in-kernel temporaries (prev/nxt/taps).
    blk = lo * cp * 4
    w_bytes = 3 * cp * cp * w_stacked.dtype.itemsize
    streams = 3 if add_res else 2
    est = 2 * streams * blk + w_bytes + 8 * blk + 3 * cp * 4
    vmem_limit = int(min(48 << 20, max(4 << 20, 2 * est)))

    return pl.pallas_call(
        _make_kernel(add_res),
        out_shape=jax.ShapeDtypeStruct((n, lo, cp), jnp.float32),
        grid=(n,),
        in_specs=in_specs,
        out_specs=tile_spec,
        compiler_params=pltpu.CompilerParams(
            dimension_semantics=("parallel",),
            vmem_limit_bytes=vmem_limit),
    )(*args)


# ---------------------------------------------------------------------------- wrapper ---

def resnet_block_forward(x, params, mxu_dtype=jnp.bfloat16):
    """x: (N, C, L) float32 (PyTorch NCL). Returns (N, C, L_out)."""
    n, c, l = x.shape
    lo = (l + 1 - 3) // 2 + 1                     # length after pad-right-1 + maxpool(3, s=2)
    cp = ((c + 127) // 128) * 128                 # lane-dense channel dim
    pad_c = cp - c

    # --- shortcut = ConstantPad1d((0,1),0) + MaxPool1d(3, stride=2): cheap, fused by XLA.
    xp = jnp.pad(x, ((0, 0), (0, 0), (0, 1)))
    t0 = xp[:, :, 0:2 * lo:2]
    t1 = xp[:, :, 1:2 * lo:2]
    t2 = xp[:, :, 2:2 * lo + 1:2]
    shortcut = jnp.maximum(jnp.maximum(t0, t1), t2)              # (N, C, lo)
    shortcut = jnp.transpose(shortcut, (0, 2, 1))                # (N, lo, C)
    shortcut = jnp.pad(shortcut, ((0, 0), (0, 0), (0, pad_c)))   # (N, lo, Cp), lane-dense

    def pad_vec(v):                                              # (C,) -> (Cp,) f32
        return jnp.pad(v.astype(jnp.float32), (0, pad_c))

    def pack_weight(w):                                          # (C_out, C_in, 3) -> (3Cp, Cp)
        wt = jnp.transpose(w, (2, 1, 0))                         # (k, C_in, C_out)
        wt = jnp.pad(wt, ((0, 0), (0, pad_c), (0, pad_c)))
        return wt.reshape(3 * cp, cp).astype(mxu_dtype)          # rows: [k=0 | k=1 | k=2]

    def bn_fold(h, g, be):
        # Training-mode BatchNorm1d: biased variance over (batch, length) per channel,
        # folded to per-channel scale/shift (two-pass f32 for numerical safety).
        mean = jnp.mean(h, axis=(0, 1))
        var = jnp.mean(jnp.square(h - mean), axis=(0, 1))
        scale = g * lax.rsqrt(var + EPS)
        shift = be - mean * scale
        return scale.reshape(1, cp), shift.reshape(1, cp)

    g1, be1 = pad_vec(params["g1"]), pad_vec(params["be1"])
    g2, be2 = pad_vec(params["g2"]), pad_vec(params["be2"])
    cb1 = pad_vec(params["cb1"]).reshape(1, cp)
    cb2 = pad_vec(params["cb2"]).reshape(1, cp)
    w1s = pack_weight(params["w1"])
    w2s = pack_weight(params["w2"])

    # Stage 1: BN1 -> ReLU -> Conv1
    s1, sh1 = bn_fold(shortcut, g1, be1)
    h1 = _bn_relu_conv_stage(shortcut, s1, sh1, w1s, cb1)

    # Stage 2: BN2 -> ReLU -> Conv2 (+ residual shortcut)
    s2, sh2 = bn_fold(h1, g2, be2)
    out = _bn_relu_conv_stage(h1, s2, sh2, w2s, cb2, residual=shortcut)

    return jnp.transpose(out[:, :, :c], (0, 2, 1))               # back to (N, C, L_out)


# -------------------------------------------------------------------------- reference ---

def reference_forward(x, params):
    """Pure-JAX reference mirroring the PyTorch module (NCL layout)."""
    n, c, l = x.shape
    lo = (l + 1 - 3) // 2 + 1
    xp = jnp.pad(x, ((0, 0), (0, 0), (0, 1)))
    shortcut = jnp.stack(
        [jnp.max(xp[:, :, 2 * i:2 * i + 3], axis=-1) for i in range(lo)], axis=-1)

    def bn(h, g, b):
        mean = jnp.mean(h, axis=(0, 2), keepdims=True)
        var = jnp.mean((h - mean) ** 2, axis=(0, 2), keepdims=True)
        return (h - mean) / jnp.sqrt(var + EPS) * g[None, :, None] + b[None, :, None]

    def conv(h, w, bias):
        o = lax.conv_general_dilated(h, w, window_strides=(1,), padding=((1, 1),),
                                     dimension_numbers=("NCH", "OIH", "NCH"))
        return o + bias[None, :, None]

    h = jnp.maximum(bn(shortcut, params["g1"], params["be1"]), 0.0)
    h = conv(h, params["w1"], params["cb1"])
    h = jnp.maximum(bn(h, params["g2"], params["be2"]), 0.0)
    h = conv(h, params["w2"], params["cb2"])
    return h + shortcut


# -------------------------------------------------------------------------------- main ---

if __name__ == "__main__":
    N, C, L = 2, 4, 16
    key = jax.random.PRNGKey(0)
    ks = jax.random.split(key, 10)
    fan = C * 3
    params = {
        "g1": 1.0 + 0.1 * jax.random.normal(ks[0], (C,), jnp.float32),
        "be1": 0.1 * jax.random.normal(ks[1], (C,), jnp.float32),
        "w1": jax.random.normal(ks[2], (C, C, 3), jnp.float32) / jnp.sqrt(float(fan)),
        "cb1": 0.1 * jax.random.normal(ks[3], (C,), jnp.float32),
        "g2": 1.0 + 0.1 * jax.random.normal(ks[4], (C,), jnp.float32),
        "be2": 0.1 * jax.random.normal(ks[5], (C,), jnp.float32),
        "w2": jax.random.normal(ks[6], (C, C, 3), jnp.float32) / jnp.sqrt(float(fan)),
        "cb2": 0.1 * jax.random.normal(ks[7], (C,), jnp.float32),
    }
    x = jax.random.normal(ks[8], (N, C, L), jnp.float32)

    ref = reference_forward(x, params)

    # Structural check with f32 MXU operands (tight tolerance).
    out_f32 = jax.block_until_ready(
        jax.jit(functools.partial(resnet_block_forward, mxu_dtype=jnp.float32))(x, params))
    assert out_f32.shape == ref.shape, (out_f32.shape, ref.shape)
    err32 = float(jnp.max(jnp.abs(out_f32 - ref)))
    assert jnp.allclose(out_f32, ref, atol=2e-2, rtol=2e-2), f"f32 path max abs err {err32}"

    # Optimized path with bf16 MXU operands (f32 accumulation); tolerance loosened
    # accordingly (bf16 operand rounding propagated through two BN stages).
    out_bf16 = jax.block_until_ready(
        jax.jit(functools.partial(resnet_block_forward, mxu_dtype=jnp.bfloat16))(x, params))
    err16 = float(jnp.max(jnp.abs(out_bf16 - ref)))
    assert jnp.allclose(out_bf16, ref, atol=5e-2, rtol=5e-2), f"bf16 path max abs err {err16}"

    print("KERNEL_OK")
</pallas_src>

<mosaic_0001>
module attributes {stable_mosaic.version = 11 : i64} {
  func.func @kernel(%arg0: i32, %arg1: memref<1x8x128xf32, #tpu.memory_space<vmem>>, %arg2: memref<1x128xf32, #tpu.memory_space<vmem>>, %arg3: memref<1x128xf32, #tpu.memory_space<vmem>>, %arg4: memref<384x128xf32, #tpu.memory_space<vmem>>, %arg5: memref<1x128xf32, #tpu.memory_space<vmem>>, %arg6: memref<1x8x128xf32, #tpu.memory_space<vmem>>) attributes {dimension_semantics = [#tpu.dimension_semantics<parallel>], iteration_bounds = array<i64: 2>, scalar_prefetch = 0 : i64, scratch_operands = 0 : i64, tpu.core_type = #tpu.core_type<tc>, window_params = [{transform_indices = @transform_0, window_bounds = array<i64: 1, 8, 128>}, {pipeline_mode = #tpu.pipeline_mode<synchronous>, transform_indices = @transform_1, window_bounds = array<i64: 1, 128>}, {pipeline_mode = #tpu.pipeline_mode<synchronous>, transform_indices = @transform_2, window_bounds = array<i64: 1, 128>}, {pipeline_mode = #tpu.pipeline_mode<synchronous>, transform_indices = @transform_3, window_bounds = array<i64: 384, 128>}, {pipeline_mode = #tpu.pipeline_mode<synchronous>, transform_indices = @transform_4, window_bounds = array<i64: 1, 128>}, {transform_indices = @transform_5, window_bounds = array<i64: 1, 8, 128>}]} {
    %c0 = arith.constant 0 : index
    %c0_0 = arith.constant 0 : index
    %c0_1 = arith.constant 0 : index
    %0 = vector.load %arg1[%c0, %c0_0, %c0_1] : memref<1x8x128xf32, #tpu.memory_space<vmem>>, vector<1x8x128xf32>
    %1 = vector.shape_cast %0 : vector<1x8x128xf32> to vector<8x128xf32>
    %c0_2 = arith.constant 0 : index
    %c0_3 = arith.constant 0 : index
    %2 = vector.load %arg2[%c0_2, %c0_3] : memref<1x128xf32, #tpu.memory_space<vmem>>, vector<1x128xf32>
    %3 = vector.broadcast %2 : vector<1x128xf32> to vector<8x128xf32>
    %4 = arith.mulf %1, %3 : vector<8x128xf32>
    %c0_4 = arith.constant 0 : index
    %c0_5 = arith.constant 0 : index
    %5 = vector.load %arg3[%c0_4, %c0_5] : memref<1x128xf32, #tpu.memory_space<vmem>>, vector<1x128xf32>
    %6 = vector.broadcast %5 : vector<1x128xf32> to vector<8x128xf32>
    %7 = arith.addf %4, %6 : vector<8x128xf32>
    %cst = arith.constant 0.000000e+00 : f32
    %8 = vector.broadcast %cst : f32 to vector<8x128xf32>
    %9 = arith.maximumf %7, %8 : vector<8x128xf32>
    %10 = tpu.iota {dimensions = array<i32: 0>} : vector<8x128xi32>
    %c0_i32 = arith.constant 0 : i32
    %11 = vector.broadcast %c0_i32 : i32 to vector<8x128xi32>
    %12 = arith.cmpi eq, %10, %11 : vector<8x128xi32>
    %c1_i32 = arith.constant 1 : i32
    %13 = tpu.dynamic_rotate %9 by %c1_i32 dim 0 : vector<8x128xf32>, i32 -> vector<8x128xf32>
    %cst_6 = arith.constant 0.000000e+00 : f32
    %14 = vector.broadcast %cst_6 : f32 to vector<8x128xf32>
    %15 = arith.select %12, %14, %13 : vector<8x128xi1>, vector<8x128xf32>
    %c7_i32 = arith.constant 7 : i32
    %16 = vector.broadcast %c7_i32 : i32 to vector<8x128xi32>
    %17 = arith.cmpi eq, %10, %16 : vector<8x128xi32>
    %c7_i32_7 = arith.constant 7 : i32
    %18 = tpu.dynamic_rotate %9 by %c7_i32_7 dim 0 : vector<8x128xf32>, i32 -> vector<8x128xf32>
    %cst_8 = arith.constant 0.000000e+00 : f32
    %19 = vector.broadcast %cst_8 : f32 to vector<8x128xf32>
    %20 = arith.select %17, %19, %18 : vector<8x128xi1>, vector<8x128xf32>
    %21 = tpu.concatenate %15, %9, %20 in 1 : vector<8x128xf32>, vector<8x128xf32>, vector<8x128xf32> -> vector<8x384xf32>
    %c0_9 = arith.constant 0 : index
    %c0_10 = arith.constant 0 : index
    %22 = vector.load %arg4[%c0_9, %c0_10] : memref<384x128xf32, #tpu.memory_space<vmem>>, vector<384x128xf32>
    %cst_11 = arith.constant dense<0.000000e+00> : vector<8x128xf32>
    %23 = tpu.matmul %21, %22, %cst_11 {dimension_numbers = #tpu.dot_dimension_numbers<[1], [0], [0], [1], [0, 0, 1, 1], [], []>} : vector<8x384xf32>, vector<384x128xf32>, vector<8x128xf32> -> vector<8x128xf32>
    %c0_12 = arith.constant 0 : index
    %c0_13 = arith.constant 0 : index
    %24 = vector.load %arg5[%c0_12, %c0_13] : memref<1x128xf32, #tpu.memory_space<vmem>>, vector<1x128xf32>
    %25 = vector.broadcast %24 : vector<1x128xf32> to vector<8x128xf32>
    %26 = arith.addf %23, %25 : vector<8x128xf32>
    %c0_14 = arith.constant 0 : index
    %c0_15 = arith.constant 0 : index
    %c0_16 = arith.constant 0 : index
    %27 = vector.load %arg6[%c0_14, %c0_15, %c0_16] : memref<1x8x128xf32, #tpu.memory_space<vmem>>, vector<1x8x128xf32>
    %28 = vector.shape_cast %27 : vector<1x8x128xf32> to vector<8x128xf32>
    %29 = vector.shape_cast %26 : vector<8x128xf32> to vector<1x8x128xf32>
    tpu.vector_store %arg6[%c0_14, %c0_15, %c0_16], %29 {strides = array<i32>} : memref<1x8x128xf32, #tpu.memory_space<vmem>>, vector<1x8x128xf32>,
    return
  }
  func.func @transform_0(%arg0: i32) -> (i32, i32, i32) {
    %c0_i32 = arith.constant 0 : i32
    %c0_i32_0 = arith.constant 0 : i32
    %c0_i32_1 = arith.constant 0 : i32
    return %arg0, %c0_i32, %c0_i32_0 : i32, i32, i32
  }
  func.func @transform_1(%arg0: i32) -> (i32, i32) {
    %c0_i32 = arith.constant 0 : i32
    %c0_i32_0 = arith.constant 0 : i32
    %c0_i32_1 = arith.constant 0 : i32
    return %c0_i32, %c0_i32_0 : i32, i32
  }
  func.func @transform_2(%arg0: i32) -> (i32, i32) {
    %c0_i32 = arith.constant 0 : i32
    %c0_i32_0 = arith.constant 0 : i32
    %c0_i32_1 = arith.constant 0 : i32
    return %c0_i32, %c0_i32_0 : i32, i32
  }
  func.func @transform_3(%arg0: i32) -> (i32, i32) {
    %c0_i32 = arith.constant 0 : i32
    %c0_i32_0 = arith.constant 0 : i32
    %c0_i32_1 = arith.constant 0 : i32
    return %c0_i32, %c0_i32_0 : i32, i32
  }
  func.func @transform_4(%arg0: i32) -> (i32, i32) {
    %c0_i32 = arith.constant 0 : i32
    %c0_i32_0 = arith.constant 0 : i32
    %c0_i32_1 = arith.constant 0 : i32
    return %c0_i32, %c0_i32_0 : i32, i32
  }
  func.func @transform_5(%arg0: i32) -> (i32, i32, i32) {
    %c0_i32 = arith.constant 0 : i32
    %c0_i32_0 = arith.constant 0 : i32
    %c0_i32_1 = arith.constant 0 : i32
    return %arg0, %c0_i32, %c0_i32_0 : i32, i32, i32
  }
}

module attributes {stable_mosaic.version = 11 : i64} {
  func.func @kernel(%arg0: i32, %arg1: memref<1x8x128xf32, #tpu.memory_space<vmem>>, %arg2: memref<1x128xf32, #tpu.memory_space<vmem>>, %arg3: memref<1x128xf32, #tpu.memory_space<vmem>>, %arg4: memref<384x128xf32, #tpu.memory_space<vmem>>, %arg5: memref<1x128xf32, #tpu.memory_space<vmem>>, %arg6: memref<1x8x128xf32, #tpu.memory_space<vmem>>, %arg7: memref<1x8x128xf32, #tpu.memory_space<vmem>>) attributes {dimension_semantics = [#tpu.dimension_semantics<parallel>], iteration_bounds = array<i64: 2>, scalar_prefetch = 0 : i64, scratch_operands = 0 : i64, tpu.core_type = #tpu.core_type<tc>, window_params = [{transform_indices = @transform_0, window_bounds = array<i64: 1, 8, 128>}, {pipeline_mode = #tpu.pipeline_mode<synchronous>, transform_indices = @transform_1, window_bounds = array<i64: 1, 128>}, {pipeline_mode = #tpu.pipeline_mode<synchronous>, transform_indices = @transform_2, window_bounds = array<i64: 1, 128>}, {pipeline_mode = #tpu.pipeline_mode<synchronous>, transform_indices = @transform_3, window_bounds = array<i64: 384, 128>}, {pipeline_mode = #tpu.pipeline_mode<synchronous>, transform_indices = @transform_4, window_bounds = array<i64: 1, 128>}, {transform_indices = @transform_5, window_bounds = array<i64: 1, 8, 128>}, {transform_indices = @transform_6, window_bounds = array<i64: 1, 8, 128>}]} {
    %c0 = arith.constant 0 : index
    %c0_0 = arith.constant 0 : index
    %c0_1 = arith.constant 0 : index
    %0 = vector.load %arg1[%c0, %c0_0, %c0_1] : memref<1x8x128xf32, #tpu.memory_space<vmem>>, vector<1x8x128xf32>
    %1 = vector.shape_cast %0 : vector<1x8x128xf32> to vector<8x128xf32>
    %c0_2 = arith.constant 0 : index
    %c0_3 = arith.constant 0 : index
    %2 = vector.load %arg2[%c0_2, %c0_3] : memref<1x128xf32, #tpu.memory_space<vmem>>, vector<1x128xf32>
    %3 = vector.broadcast %2 : vector<1x128xf32> to vector<8x128xf32>
    %4 = arith.mulf %1, %3 : vector<8x128xf32>
    %c0_4 = arith.constant 0 : index
    %c0_5 = arith.constant 0 : index
    %5 = vector.load %arg3[%c0_4, %c0_5] : memref<1x128xf32, #tpu.memory_space<vmem>>, vector<1x128xf32>
    %6 = vector.broadcast %5 : vector<1x128xf32> to vector<8x128xf32>
    %7 = arith.addf %4, %6 : vector<8x128xf32>
    %cst = arith.constant 0.000000e+00 : f32
    %8 = vector.broadcast %cst : f32 to vector<8x128xf32>
    %9 = arith.maximumf %7, %8 : vector<8x128xf32>
    %10 = tpu.iota {dimensions = array<i32: 0>} : vector<8x128xi32>
    %c0_i32 = arith.constant 0 : i32
    %11 = vector.broadcast %c0_i32 : i32 to vector<8x128xi32>
    %12 = arith.cmpi eq, %10, %11 : vector<8x128xi32>
    %c1_i32 = arith.constant 1 : i32
    %13 = tpu.dynamic_rotate %9 by %c1_i32 dim 0 : vector<8x128xf32>, i32 -> vector<8x128xf32>
    %cst_6 = arith.constant 0.000000e+00 : f32
    %14 = vector.broadcast %cst_6 : f32 to vector<8x128xf32>
    %15 = arith.select %12, %14, %13 : vector<8x128xi1>, vector<8x128xf32>
    %c7_i32 = arith.constant 7 : i32
    %16 = vector.broadcast %c7_i32 : i32 to vector<8x128xi32>
    %17 = arith.cmpi eq, %10, %16 : vector<8x128xi32>
    %c7_i32_7 = arith.constant 7 : i32
    %18 = tpu.dynamic_rotate %9 by %c7_i32_7 dim 0 : vector<8x128xf32>, i32 -> vector<8x128xf32>
    %cst_8 = arith.constant 0.000000e+00 : f32
    %19 = vector.broadcast %cst_8 : f32 to vector<8x128xf32>
    %20 = arith.select %17, %19, %18 : vector<8x128xi1>, vector<8x128xf32>
    %21 = tpu.concatenate %15, %9, %20 in 1 : vector<8x128xf32>, vector<8x128xf32>, vector<8x128xf32> -> vector<8x384xf32>
    %c0_9 = arith.constant 0 : index
    %c0_10 = arith.constant 0 : index
    %22 = vector.load %arg4[%c0_9, %c0_10] : memref<384x128xf32, #tpu.memory_space<vmem>>, vector<384x128xf32>
    %cst_11 = arith.constant dense<0.000000e+00> : vector<8x128xf32>
    %23 = tpu.matmul %21, %22, %cst_11 {dimension_numbers = #tpu.dot_dimension_numbers<[1], [0], [0], [1], [0, 0, 1, 1], [], []>} : vector<8x384xf32>, vector<384x128xf32>, vector<8x128xf32> -> vector<8x128xf32>
    %c0_12 = arith.constant 0 : index
    %c0_13 = arith.constant 0 : index
    %24 = vector.load %arg5[%c0_12, %c0_13] : memref<1x128xf32, #tpu.memory_space<vmem>>, vector<1x128xf32>
    %25 = vector.broadcast %24 : vector<1x128xf32> to vector<8x128xf32>
    %26 = arith.addf %23, %25 : vector<8x128xf32>
    %c0_14 = arith.constant 0 : index
    %c0_15 = arith.constant 0 : index
    %c0_16 = arith.constant 0 : index
    %27 = vector.load %arg6[%c0_14, %c0_15, %c0_16] : memref<1x8x128xf32, #tpu.memory_space<vmem>>, vector<1x8x128xf32>
    %28 = vector.shape_cast %27 : vector<1x8x128xf32> to vector<8x128xf32>
    %29 = arith.addf %26, %28 : vector<8x128xf32>
    %c0_17 = arith.constant 0 : index
    %c0_18 = arith.constant 0 : index
    %c0_19 = arith.constant 0 : index
    %30 = vector.load %arg7[%c0_17, %c0_18, %c0_19] : memref<1x8x128xf32, #tpu.memory_space<vmem>>, vector<1x8x128xf32>
    %31 = vector.shape_cast %30 : vector<1x8x128xf32> to vector<8x128xf32>
    %32 = vector.shape_cast %29 : vector<8x128xf32> to vector<1x8x128xf32>
    tpu.vector_store %arg7[%c0_17, %c0_18, %c0_19], %32 {strides = array<i32>} : memref<1x8x128xf32, #tpu.memory_space<vmem>>, vector<1x8x128xf32>,
    return
  }
  func.func @transform_0(%arg0: i32) -> (i32, i32, i32) {
    %c0_i32 = arith.constant 0 : i32
    %c0_i32_0 = arith.constant 0 : i32
    %c0_i32_1 = arith.constant 0 : i32
    return %arg0, %c0_i32, %c0_i32_0 : i32, i32, i32
  }
  func.func @transform_1(%arg0: i32) -> (i32, i32) {
    %c0_i32 = arith.constant 0 : i32
    %c0_i32_0 = arith.constant 0 : i32
    %c0_i32_1 = arith.constant 0 : i32
    return %c0_i32, %c0_i32_0 : i32, i32
  }
  func.func @transform_2(%arg0: i32) -> (i32, i32) {
    %c0_i32 = arith.constant 0 : i32
    %c0_i32_0 = arith.constant 0 : i32
    %c0_i32_1 = arith.constant 0 : i32
    return %c0_i32, %c0_i32_0 : i32, i32
  }
  func.func @transform_3(%arg0: i32) -> (i32, i32) {
    %c0_i32 = arith.constant 0 : i32
    %c0_i32_0 = arith.constant 0 : i32
    %c0_i32_1 = arith.constant 0 : i32
    return %c0_i32, %c0_i32_0 : i32, i32
  }
  func.func @transform_4(%arg0: i32) -> (i32, i32) {
    %c0_i32 = arith.constant 0 : i32
    %c0_i32_0 = arith.constant 0 : i32
    %c0_i32_1 = arith.constant 0 : i32
    return %c0_i32, %c0_i32_0 : i32, i32
  }
  func.func @transform_5(%arg0: i32) -> (i32, i32, i32) {
    %c0_i32 = arith.constant 0 : i32
    %c0_i32_0 = arith.constant 0 : i32
    %c0_i32_1 = arith.constant 0 : i32
    return %arg0, %c0_i32, %c0_i32_0 : i32, i32, i32
  }
  func.func @transform_6(%arg0: i32) -> (i32, i32, i32) {
    %c0_i32 = arith.constant 0 : i32
    %c0_i32_0 = arith.constant 0 : i32
    %c0_i32_1 = arith.constant 0 : i32
    return %arg0, %c0_i32, %c0_i32_0 : i32, i32, i32
  }
}

</mosaic_0001>

<bundles_post_ra>
// kernel: resnet_block_forward.2
= control target key start
LH: loop header
LB: loop body
LE: loop exit
PB: predicated region body
PF: predicated region fallthrough
CT: control target
= control target key end

     0   :  { %s470_s18 = smov 0   ;;  %s653_s0 = inlined_call_operand.vmem [shape: f32[2,8,128], index: 0, kind: input, shape index: {}]   ;;  %s654_s1 = inlined_call_operand.vmem [shape: f32[1,128], index: 1, kind: input, shape index: {}]   ;;  %s655_s2 = inlined_call_operand.vmem [shape: f32[1,128], index: 2, kind: input, shape index: {}]   ;;  %s656_s3 = inlined_call_operand.vmem [shape: f32[384,128], index: 3, kind: input, shape index: {}]   ;;  %s657_s4 = inlined_call_operand.vmem [shape: f32[1,128], index: 4, kind: input, shape index: {}]   ;;  %s658_s5 = inlined_call_operand.vmem [shape: f32[2,8,128], index: 5, kind: output, shape index: {}]  }
   0x1 LB: > { %s406_s19 = sadd.s32 4294967295, %s438_s18   ;;  %p410_p0 = scmp.ge.s32.totalorder %s438_s18, 1  ;;  %s438_s18 = sphi %s470_s18, %s15_s18  }
   0x2   : > { %p186_p1 = scmp.lt.s32.totalorder %s438_s18, 3 }
   0x4   : > { %p187_p2 = pnand %p410_p0, %p186_p1 }
   0x5   : > { %p493_p3 = scmp.lt.s32.totalorder (!%p187_p2), %s406_s19, 1 }
   0x6   : > { %190 = sbr.rel (%p187_p2) target bundleno = 178 (0xb2), region = 40 }
   0xb   : > { %v287_v0 = vld [vmem:[%s656_s3 + $0x178] sm:$0xff]  ;;  %v286_v2 = vld [vmem:[%s656_s3 + $0x170] sm:$0xff]  ;;  %v285_v5 = vld [vmem:[%s656_s3 + $0x168] sm:$0xff]  ;;  %s661_s19 = smov (!%p493_p3, %s406_s19), 1  ;;  %v232_v41 = vlaneseq }
   0xc   : > { %v255_v1 = vld [vmem:[%s656_s3 + $0x78] sm:$0xff]  ;;  %332 = vmatpush.msra.mxu2 %v287_v0  ;;  %v254_v3 = vld [vmem:[%s656_s3 + $0x70] sm:$0xff]  ;;  %v253_v6 = vld [vmem:[%s656_s3 + $0x68] sm:$0xff]  ;;  %s411_s9 = sshll.u32 %s661_s19, 3 }
   0xd   : > { %292 = vmatpush.msra.mxu0 %v255_v1  ;;  %v271_v4 = vld [vmem:[%s656_s3 + $0xf8] sm:$0xff]  ;;  %v270_v7 = vld [vmem:[%s656_s3 + $0xf0] sm:$0xff]  ;;  %v269_v8 = vld [vmem:[%s656_s3 + $0xe8] sm:$0xff]  ;;  %s215_s24 = scalar_lea.vmem %s653_s0, %s411_s9  ;;  %v233_v49 = vshrl.u32 %v232_v41, 7  ;;  %s219_s15 = scalar_lea.vmem %s658_s5, %s411_s9 }
   0xe   : > { %312 = vmatpush.msra.mxu1 %v271_v4  ;;  %333 = vmatpush.msra.mxu2 %v286_v2  ;;  %v284_v9 = vld [vmem:[%s656_s3 + $0x160] sm:$0xff]  ;;  %v283_v12 = vld [vmem:[%s656_s3 + $0x158] sm:$0xff]  ;;  %v282_v15 = vld [vmem:[%s656_s3 + $0x150] sm:$0xff] }
   0xf   : > { %293 = vmatpush.msra.mxu0 %v254_v3  ;;  %v252_v10 = vld [vmem:[%s656_s3 + $0x60] sm:$0xff]  ;;  %v251_v13 = vld [vmem:[%s656_s3 + $0x58] sm:$0xff]  ;;  %v250_v16 = vld [vmem:[%s656_s3 + $0x50] sm:$0xff]  ;;  %vm420_vm0 = vcmp.ne.s32.totalorder %v233_v49, 7  ;;  %vm419_vm1 = vcmp.ne.s32.totalorder %v233_v49, 0 }
  0x10   : > { %313 = vmatpush.msra.mxu1 %v270_v7  ;;  %334 = vmatpush.msra.mxu2 %v285_v5  ;;  %v268_v11 = vld [vmem:[%s656_s3 + $0xe0] sm:$0xff]  ;;  %v267_v14 = vld [vmem:[%s656_s3 + $0xd8] sm:$0xff]  ;;  %v266_v17 = vld [vmem:[%s656_s3 + $0xd0] sm:$0xff] }
  0x11   : > { %294 = vmatpush.msra.mxu0 %v253_v6  ;;  %v281_v18 = vld [vmem:[%s656_s3 + $0x148] sm:$0xff]  ;;  %v280_v21 = vld [vmem:[%s656_s3 + $0x140] sm:$0xff]  ;;  %v279_v23 = vld [vmem:[%s656_s3 + $0x138] sm:$0xff] }
  0x12   : > { %314 = vmatpush.msra.mxu1 %v269_v8  ;;  %335 = vmatpush.msra.mxu2 %v284_v9  ;;  %v249_v19 = vld [vmem:[%s656_s3 + $0x48] sm:$0xff]  ;;  %v248_v22 = vld [vmem:[%s656_s3 + $0x40] sm:$0xff]  ;;  %v247_v25 = vld [vmem:[%s656_s3 + $0x38] sm:$0xff] }
  0x13   : > { %295 = vmatpush.msra.mxu0 %v252_v10  ;;  %v265_v20 = vld [vmem:[%s656_s3 + $0xc8] sm:$0xff]  ;;  %v264_v24 = vld [vmem:[%s656_s3 + $0xc0] sm:$0xff]  ;;  %v278_v26 = vld [vmem:[%s656_s3 + $0x130] sm:$0xff] }
  0x14   : > { %315 = vmatpush.msra.mxu1 %v268_v11  ;;  %336 = vmatpush.msra.mxu2 %v283_v12  ;;  %v263_v27 = vld [vmem:[%s656_s3 + $0xb8] sm:$0xff]  ;;  %v220_v28 = vld [vmem:[%s215_s24] sm:$0xff]  ;;  %v246_v30 = vld [vmem:[%s656_s3 + $0x30] sm:$0xff] }
  0x15   : > { %296 = vmatpush.msra.mxu0 %v251_v13  ;;  %v429_v29 = vld [vmem:[%s654_s1] ss:$0 sm:$0xff]  ;;  %v262_v32 = vld [vmem:[%s656_s3 + $0xb0] sm:$0xff]  ;;  %v277_v34 = vld [vmem:[%s656_s3 + $0x128] sm:$0xff] }
  0x16   : > { %316 = vmatpush.msra.mxu1 %v267_v14  ;;  %337 = vmatpush.msra.mxu2 %v282_v15  ;;  %v430_v31 = vld [vmem:[%s655_s2] ss:$0 sm:$0xff]  ;;  %v225_v33 = vmul.f32 %v429_v29, %v220_v28  ;;  %v245_v35 = vld [vmem:[%s656_s3 + $0x28] sm:$0xff]  ;;  %v275_v42 = vld [vmem:[%s656_s3 + $0x118] sm:$0xff] }
  0x17   : > { %297 = vmatpush.msra.mxu0 %v250_v16  ;;  %v261_v36 = vld [vmem:[%s656_s3 + $0xa8] sm:$0xff]  ;;  %v276_v37 = vld [vmem:[%s656_s3 + $0x120] sm:$0xff]  ;;  %v243_v43 = vld [vmem:[%s656_s3 + $0x18] sm:$0xff] }
  0x18   : > { %317 = vmatpush.msra.mxu1 %v266_v17  ;;  %338 = vmatpush.msra.mxu2 %v281_v18  ;;  %v244_v38 = vld [vmem:[%s656_s3 + $0x20] sm:$0xff]  ;;  %v230_v39 = vadd.f32 %v430_v31, %v225_v33  ;;  %v259_v44 = vld [vmem:[%s656_s3 + $0x98] sm:$0xff]  ;;  %v274_v45 = vld [vmem:[%s656_s3 + $0x110] sm:$0xff] }
  0x19   : > { %298 = vmatpush.msra.mxu0 %v249_v19  ;;  %v260_v40 = vld [vmem:[%s656_s3 + $0xa0] sm:$0xff]  ;;  %v242_v46 = vld [vmem:[%s656_s3 + $0x10] sm:$0xff]  ;;  %v273_v50 = vld [vmem:[%s656_s3 + $0x108] sm:$0xff] }
  0x1a   : > { %318 = vmatpush.msra.mxu1 %v265_v20  ;;  %339 = vmatpush.msra.mxu2 %v280_v21  ;;  %v231_v47 = vmax.f32 %v230_v39, 0.0  ;;  %v258_v48 = vld [vmem:[%s656_s3 + $0x90] sm:$0xff]  ;;  %v241_v51 = vld [vmem:[%s656_s3 + $0x8] sm:$0xff]  ;;  %v272_v53 = vld [vmem:[%s656_s3 + $0x100] sm:$0xff] }
  0x1b   : > { %299 = vmatpush.msra.mxu0 %v248_v22  ;;  %v257_v52 = vld [vmem:[%s656_s3 + $0x88] sm:$0xff]  ;;  %v240_v55 = vld [vmem:[%s656_s3] sm:$0xff] }
  0x1c   : > { %319 = vmatpush.msra.mxu1 %v264_v24  ;;  %340 = vmatpush.msra.mxu2 %v279_v23  ;;  %v238_v54 = vrot.slane %v231_v47, 1  ;;  %v235_v56 = vrot.slane %v231_v47, 7  ;;  %v256_v57 = vld [vmem:[%s656_s3 + $0x80] sm:$0xff] }
  0x1d   : > { %300 = vmatpush.msra.mxu0 %v247_v25  ;;  %v431_v58 = vld [vmem:[%s657_s4] ss:$0 sm:$0xff] }
  0x1e   : > { %320 = vmatpush.msra.mxu1 %v263_v27  ;;  %341 = vmatpush.msra.mxu2 %v278_v26 }
  0x1f   : > { %301 = vmatpush.msra.mxu0 %v246_v30 }
  0x20   : > { %321 = vmatpush.msra.mxu1 %v262_v32  ;;  %342 = vmatpush.msra.mxu2 %v277_v34 }
  0x21   : > { %302 = vmatpush.msra.mxu0 %v245_v35 }
  0x22   : > { %322 = vmatpush.msra.mxu1 %v261_v36  ;;  %343 = vmatpush.msra.mxu2 %v276_v37 }
  0x23   : > { %303 = vmatpush.msra.mxu0 %v244_v38 }
  0x24   : > { %323 = vmatpush.msra.mxu1 %v260_v40  ;;  %344 = vmatpush.msra.mxu2 %v275_v42 }
  0x25   : > { %304 = vmatpush.msra.mxu0 %v243_v43 }
  0x26   : > { %324 = vmatpush.msra.mxu1 %v259_v44  ;;  %345 = vmatpush.msra.mxu2 %v274_v45 }
  0x27   : > { %305 = vmatpush.msra.mxu0 %v242_v46 }
  0x28   : > { %325 = vmatpush.msra.mxu1 %v258_v48  ;;  %346 = vmatpush.msra.mxu2 %v273_v50 }
  0x29   : > { %306 = vmatpush.msra.mxu0 %v241_v51 }
  0x2a   : > { %326 = vmatpush.msra.mxu1 %v257_v52  ;;  %347 = vmatpush.msra.mxu2 %v272_v53 }
  0x2b   : > { %307 = vmatpush.msra.mxu0 %v240_v55  ;;  %416 = vmatmul.msk.f32.vlgmr.msra.gmra.mxu2 %vm420_vm0, %v238_v54 }
  0x2c   : > { %414 = vmatmul.msk.f32.vlgmr.msra.gmra.mxu0 %vm419_vm1, %v235_v56  ;;  %327 = vmatpush.msra.mxu1 %v256_v57 }
  0x2d   : > { %328 = vmatmul.f32.vlgmr.msra.gmra.mxu1 %v231_v47 }
  0xa9   : > { %v309_v59 = vpop.f32.mrf.mxu0 }
  0xaa   : > { %v310_v60 = vadd.f32 %v431_v58, %v309_v59  ;;  %v329_v61 = vpop.f32.mrf.mxu1 }
  0xac   : > { %v330_v62 = vadd.f32 %v329_v61, %v310_v60 }
  0xae   : > { %v349_v63 = vpop.f32.mrf.mxu2 }
  0xaf   : > { %v350_v0 = vadd.f32 %v349_v63, %v330_v62 }
  0xb1   : > { %352 = vst [vmem:[%s219_s15] sm:$0xff] %v350_v0 }
  0xb2 PF: > { %s15_s18 = sadd.s32 1, %s438_s18  }
  0xb3   : > { %p12_p4 = scmp.ge.s32.totalorder %s15_s18, 4  }
  0xb5   :  { %14 = sbr.rel (!%p12_p4) target bundleno = 1 (0x1), region = 70 }

// kernel: resnet_block_forward.3
= control target key start
LH: loop header
LB: loop body
LE: loop exit
PB: predicated region body
PF: predicated region fallthrough
CT: control target
= control target key end

     0   :  { %s534_s21 = smov 0   ;;  %s718_s0 = inlined_call_operand.vmem [shape: f32[2,8,128], index: 0, kind: input, shape index: {}]   ;;  %s719_s1 = inlined_call_operand.vmem [shape: f32[1,128], index: 1, kind: input, shape index: {}]   ;;  %s720_s2 = inlined_call_operand.vmem [shape: f32[1,128], index: 2, kind: input, shape index: {}]   ;;  %s721_s3 = inlined_call_operand.vmem [shape: f32[384,128], index: 3, kind: input, shape index: {}]   ;;  %s722_s4 = inlined_call_operand.vmem [shape: f32[1,128], index: 4, kind: input, shape index: {}]   ;;  %s723_s5 = inlined_call_operand.vmem [shape: f32[2,8,128], index: 5, kind: input, shape index: {}]   ;;  %s724_s6 = inlined_call_operand.vmem [shape: f32[2,8,128], index: 6, kind: output, shape index: {}]  }
   0x1 LB: > { %s464_s22 = sadd.s32 4294967295, %s497_s21   ;;  %p468_p0 = scmp.ge.s32.totalorder %s497_s21, 1  ;;  %s497_s21 = sphi %s534_s21, %s16_s21  }
   0x2   : > { %p220_p1 = scmp.lt.s32.totalorder %s497_s21, 3 }
   0x4   : > { %p221_p2 = pnand %p468_p0, %p220_p1 }
   0x5   : > { %p557_p3 = scmp.lt.s32.totalorder (!%p221_p2), %s464_s22, 1 }
   0x6   : > { %224 = sbr.rel (%p221_p2) target bundleno = 180 (0xb4), region = 44 }
   0xb   : > { %v331_v0 = vld [vmem:[%s721_s3 + $0x178] sm:$0xff]  ;;  %v330_v2 = vld [vmem:[%s721_s3 + $0x170] sm:$0xff]  ;;  %v329_v5 = vld [vmem:[%s721_s3 + $0x168] sm:$0xff]  ;;  %s727_s22 = smov (!%p557_p3, %s464_s22), 1  ;;  %v276_v41 = vlaneseq }
   0xc   : > { %v299_v1 = vld [vmem:[%s721_s3 + $0x78] sm:$0xff]  ;;  %376 = vmatpush.msra.mxu2 %v331_v0  ;;  %v298_v3 = vld [vmem:[%s721_s3 + $0x70] sm:$0xff]  ;;  %v297_v6 = vld [vmem:[%s721_s3 + $0x68] sm:$0xff]  ;;  %s602_s14 = sshll.u32 %s727_s22, 3 }
   0xd   : > { %336 = vmatpush.msra.mxu0 %v299_v1  ;;  %v315_v4 = vld [vmem:[%s721_s3 + $0xf8] sm:$0xff]  ;;  %v314_v7 = vld [vmem:[%s721_s3 + $0xf0] sm:$0xff]  ;;  %v313_v8 = vld [vmem:[%s721_s3 + $0xe8] sm:$0xff]  ;;  %s255_s28 = scalar_lea.vmem %s718_s0, %s602_s14  ;;  %v277_v49 = vshrl.u32 %v276_v41, 7  ;;  %s259_s20 = scalar_lea.vmem %s723_s5, %s602_s14 }
   0xe   : > { %356 = vmatpush.msra.mxu1 %v315_v4  ;;  %377 = vmatpush.msra.mxu2 %v330_v2  ;;  %v328_v9 = vld [vmem:[%s721_s3 + $0x160] sm:$0xff]  ;;  %v327_v12 = vld [vmem:[%s721_s3 + $0x158] sm:$0xff]  ;;  %v326_v15 = vld [vmem:[%s721_s3 + $0x150] sm:$0xff]  ;;  %s263_s24 = scalar_lea.vmem %s724_s6, %s602_s14 }
   0xf   : > { %337 = vmatpush.msra.mxu0 %v298_v3  ;;  %v296_v10 = vld [vmem:[%s721_s3 + $0x60] sm:$0xff]  ;;  %v295_v13 = vld [vmem:[%s721_s3 + $0x58] sm:$0xff]  ;;  %v294_v16 = vld [vmem:[%s721_s3 + $0x50] sm:$0xff]  ;;  %vm479_vm0 = vcmp.ne.s32.totalorder %v277_v49, 7  ;;  %vm478_vm1 = vcmp.ne.s32.totalorder %v277_v49, 0 }
  0x10   : > { %357 = vmatpush.msra.mxu1 %v314_v7  ;;  %378 = vmatpush.msra.mxu2 %v329_v5  ;;  %v312_v11 = vld [vmem:[%s721_s3 + $0xe0] sm:$0xff]  ;;  %v311_v14 = vld [vmem:[%s721_s3 + $0xd8] sm:$0xff]  ;;  %v310_v17 = vld [vmem:[%s721_s3 + $0xd0] sm:$0xff] }
  0x11   : > { %338 = vmatpush.msra.mxu0 %v297_v6  ;;  %v325_v18 = vld [vmem:[%s721_s3 + $0x148] sm:$0xff]  ;;  %v324_v21 = vld [vmem:[%s721_s3 + $0x140] sm:$0xff]  ;;  %v323_v23 = vld [vmem:[%s721_s3 + $0x138] sm:$0xff] }
  0x12   : > { %358 = vmatpush.msra.mxu1 %v313_v8  ;;  %379 = vmatpush.msra.mxu2 %v328_v9  ;;  %v293_v19 = vld [vmem:[%s721_s3 + $0x48] sm:$0xff]  ;;  %v292_v22 = vld [vmem:[%s721_s3 + $0x40] sm:$0xff]  ;;  %v291_v25 = vld [vmem:[%s721_s3 + $0x38] sm:$0xff] }
  0x13   : > { %339 = vmatpush.msra.mxu0 %v296_v10  ;;  %v309_v20 = vld [vmem:[%s721_s3 + $0xc8] sm:$0xff]  ;;  %v308_v24 = vld [vmem:[%s721_s3 + $0xc0] sm:$0xff]  ;;  %v322_v26 = vld [vmem:[%s721_s3 + $0x130] sm:$0xff] }
  0x14   : > { %359 = vmatpush.msra.mxu1 %v312_v11  ;;  %380 = vmatpush.msra.mxu2 %v327_v12  ;;  %v307_v27 = vld [vmem:[%s721_s3 + $0xb8] sm:$0xff]  ;;  %v264_v28 = vld [vmem:[%s255_s28] sm:$0xff]  ;;  %v290_v30 = vld [vmem:[%s721_s3 + $0x30] sm:$0xff] }
  0x15   : > { %340 = vmatpush.msra.mxu0 %v295_v13  ;;  %v488_v29 = vld [vmem:[%s719_s1] ss:$0 sm:$0xff]  ;;  %v306_v32 = vld [vmem:[%s721_s3 + $0xb0] sm:$0xff]  ;;  %v321_v34 = vld [vmem:[%s721_s3 + $0x128] sm:$0xff] }
  0x16   : > { %360 = vmatpush.msra.mxu1 %v311_v14  ;;  %381 = vmatpush.msra.mxu2 %v326_v15  ;;  %v489_v31 = vld [vmem:[%s720_s2] ss:$0 sm:$0xff]  ;;  %v269_v33 = vmul.f32 %v488_v29, %v264_v28  ;;  %v289_v35 = vld [vmem:[%s721_s3 + $0x28] sm:$0xff]  ;;  %v319_v42 = vld [vmem:[%s721_s3 + $0x118] sm:$0xff] }
  0x17   : > { %341 = vmatpush.msra.mxu0 %v294_v16  ;;  %v305_v36 = vld [vmem:[%s721_s3 + $0xa8] sm:$0xff]  ;;  %v320_v37 = vld [vmem:[%s721_s3 + $0x120] sm:$0xff]  ;;  %v287_v43 = vld [vmem:[%s721_s3 + $0x18] sm:$0xff] }
  0x18   : > { %361 = vmatpush.msra.mxu1 %v310_v17  ;;  %382 = vmatpush.msra.mxu2 %v325_v18  ;;  %v288_v38 = vld [vmem:[%s721_s3 + $0x20] sm:$0xff]  ;;  %v274_v39 = vadd.f32 %v489_v31, %v269_v33  ;;  %v303_v44 = vld [vmem:[%s721_s3 + $0x98] sm:$0xff]  ;;  %v318_v45 = vld [vmem:[%s721_s3 + $0x110] sm:$0xff] }
  0x19   : > { %342 = vmatpush.msra.mxu0 %v293_v19  ;;  %v304_v40 = vld [vmem:[%s721_s3 + $0xa0] sm:$0xff]  ;;  %v286_v46 = vld [vmem:[%s721_s3 + $0x10] sm:$0xff]  ;;  %v317_v50 = vld [vmem:[%s721_s3 + $0x108] sm:$0xff] }
  0x1a   : > { %362 = vmatpush.msra.mxu1 %v309_v20  ;;  %383 = vmatpush.msra.mxu2 %v324_v21  ;;  %v275_v47 = vmax.f32 %v274_v39, 0.0  ;;  %v302_v48 = vld [vmem:[%s721_s3 + $0x90] sm:$0xff]  ;;  %v285_v51 = vld [vmem:[%s721_s3 + $0x8] sm:$0xff]  ;;  %v316_v53 = vld [vmem:[%s721_s3 + $0x100] sm:$0xff] }
  0x1b   : > { %343 = vmatpush.msra.mxu0 %v292_v22  ;;  %v301_v52 = vld [vmem:[%s721_s3 + $0x88] sm:$0xff]  ;;  %v284_v55 = vld [vmem:[%s721_s3] sm:$0xff] }
  0x1c   : > { %363 = vmatpush.msra.mxu1 %v308_v24  ;;  %384 = vmatpush.msra.mxu2 %v323_v23  ;;  %v282_v54 = vrot.slane %v275_v47, 1  ;;  %v279_v56 = vrot.slane %v275_v47, 7  ;;  %v300_v57 = vld [vmem:[%s721_s3 + $0x80] sm:$0xff] }
  0x1d   : > { %344 = vmatpush.msra.mxu0 %v291_v25  ;;  %v490_v58 = vld [vmem:[%s722_s4] ss:$0 sm:$0xff] }
  0x1e   : > { %364 = vmatpush.msra.mxu1 %v307_v27  ;;  %385 = vmatpush.msra.mxu2 %v322_v26  ;;  %v396_v0 = vld [vmem:[%s259_s20] sm:$0xff] }
  0x1f   : > { %345 = vmatpush.msra.mxu0 %v290_v30 }
  0x20   : > { %365 = vmatpush.msra.mxu1 %v306_v32  ;;  %386 = vmatpush.msra.mxu2 %v321_v34 }
  0x21   : > { %346 = vmatpush.msra.mxu0 %v289_v35 }
  0x22   : > { %366 = vmatpush.msra.mxu1 %v305_v36  ;;  %387 = vmatpush.msra.mxu2 %v320_v37 }
  0x23   : > { %347 = vmatpush.msra.mxu0 %v288_v38 }
  0x24   : > { %367 = vmatpush.msra.mxu1 %v304_v40  ;;  %388 = vmatpush.msra.mxu2 %v319_v42 }
  0x25   : > { %348 = vmatpush.msra.mxu0 %v287_v43 }
  0x26   : > { %368 = vmatpush.msra.mxu1 %v303_v44  ;;  %389 = vmatpush.msra.mxu2 %v318_v45 }
  0x27   : > { %349 = vmatpush.msra.mxu0 %v286_v46 }
  0x28   : > { %369 = vmatpush.msra.mxu1 %v302_v48  ;;  %390 = vmatpush.msra.mxu2 %v317_v50 }
  0x29   : > { %350 = vmatpush.msra.mxu0 %v285_v51 }
  0x2a   : > { %370 = vmatpush.msra.mxu1 %v301_v52  ;;  %391 = vmatpush.msra.mxu2 %v316_v53 }
  0x2b   : > { %351 = vmatpush.msra.mxu0 %v284_v55  ;;  %475 = vmatmul.msk.f32.vlgmr.msra.gmra.mxu2 %vm479_vm0, %v282_v54 }
  0x2c   : > { %473 = vmatmul.msk.f32.vlgmr.msra.gmra.mxu0 %vm478_vm1, %v279_v56  ;;  %371 = vmatpush.msra.mxu1 %v300_v57 }
  0x2d   : > { %372 = vmatmul.f32.vlgmr.msra.gmra.mxu1 %v275_v47 }
  0xa9   : > { %v353_v59 = vpop.f32.mrf.mxu0 }
  0xaa   : > { %v354_v60 = vadd.f32 %v490_v58, %v353_v59  ;;  %v373_v61 = vpop.f32.mrf.mxu1 }
  0xac   : > { %v374_v62 = vadd.f32 %v373_v61, %v354_v60 }
  0xae   : > { %v393_v63 = vpop.f32.mrf.mxu2 }
  0xaf   : > { %v394_v1 = vadd.f32 %v393_v63, %v374_v62 }
  0xb1   : > { %v397_v2 = vadd.f32 %v396_v0, %v394_v1 }
  0xb3   : > { %398 = vst [vmem:[%s263_s24] sm:$0xff] %v397_v2 }
  0xb4 PF: > { %s16_s21 = sadd.s32 1, %s497_s21  }
  0xb5   : > { %p13_p4 = scmp.ge.s32.totalorder %s16_s21, 4  }
  0xb7   :  { %15 = sbr.rel (!%p13_p4) target bundleno = 1 (0x1), region = 77 }

</bundles_post_ra>
